<compile_context>
chip_gen: v6e
topology: v6e:2x2x1
jax: 0.10.0
libtpu: 0.0.40
codegen_flags: <defaults>
</compile_context>

<pallas_src>
import functools
import math

import numpy as np
import jax
import jax.numpy as jnp
from jax.experimental import pallas as pl
from jax.experimental.pallas import tpu as pltpu


# ----------------------------------------------------------------------------
# Deterministic filter construction (mirrors kaiser_sinc_filter1d from the repo)
# ----------------------------------------------------------------------------
def kaiser_sinc_filter1d(cutoff, half_width, kernel_size):
    even = (kernel_size % 2 == 0)
    half_size = kernel_size // 2

    delta_f = 4 * half_width
    A = 2.285 * (half_size - 1) * math.pi * delta_f + 7.95
    if A > 50.0:
        beta = 0.1102 * (A - 8.7)
    elif A >= 21.0:
        beta = 0.5842 * (A - 21.0) ** 0.4 + 0.07886 * (A - 21.0)
    else:
        beta = 0.0
    window = np.kaiser(kernel_size, beta)  # == torch.kaiser_window(periodic=False)

    if even:
        time = np.arange(-half_size, half_size) + 0.5
    else:
        time = np.arange(kernel_size) - half_size

    if cutoff == 0:
        return np.zeros(kernel_size, dtype=np.float32)
    filt = 2 * cutoff * window * np.sinc(2 * cutoff * time)  # np.sinc == torch sinc
    filt = filt / filt.sum()
    return filt.astype(np.float32)


def _round_up(x, m):
    return ((x + m - 1) // m) * m


HALO = 128  # cross-tile halo, in lanes (must stay a multiple of 128)


# ----------------------------------------------------------------------------
# Pallas kernel: polyphase depthwise FIR on one (R_TILE, T_TILE) output block
# ----------------------------------------------------------------------------
def _make_fir_kernel(taps, stride, t_tile):
    K = len(taps)

    def kernel(main_ref, halo_ref, o_ref, win_ref):
        # main_ref: (stride, R_TILE, T_TILE)        phase-split input, this tile
        # halo_ref: (stride, R_TILE, HALO)          next 128 lanes (cross-tile halo)
        # o_ref:    (R_TILE, T_TILE)                downsampled output block
        # win_ref:  (stride, R_TILE, T_TILE + HALO) VMEM scratch (stitched window)
        #
        # Stitch main + halo with two lane-aligned whole-block copies.
        # TODO(synk): replace main+halo+stitch with one pl.Element overlapping-window
        # input spec once that path is load-bearing (v7x VMEM-load-slot concern).
        win_ref[:, :, :t_tile] = main_ref[...]
        win_ref[:, :, t_tile:] = halo_ref[...]

        # Two partial accumulators keep more VALU slots fed; merged once at the end.
        acc0 = jnp.zeros(o_ref.shape, jnp.float32)
        acc1 = jnp.zeros(o_ref.shape, jnp.float32)
        for k in range(K):                 # static, fully unrolled (K = 6*ratio, small)
            p = k % stride                 # polyphase branch
            j = k // stride                # intra-phase lane offset (static, 0..(K-1)//stride)
            term = taps[k] * win_ref[p, :, pl.ds(j, t_tile)].astype(jnp.float32)
            if k % 2 == 0:
                acc0 = acc0 + term
            else:
                acc1 = acc1 + term
        o_ref[...] = (acc0 + acc1).astype(o_ref.dtype)

    return kernel


# ----------------------------------------------------------------------------
# Wrapper: DownSample1d forward
# ----------------------------------------------------------------------------
@functools.partial(jax.jit, static_argnames=("ratio", "kernel_size", "r_tile", "t_tile"))
def downsample1d(x, ratio=2, kernel_size=None, r_tile=256, t_tile=2048):
    B, C, T = x.shape
    K = int(6 * ratio // 2) * 2 if kernel_size is None else kernel_size
    stride = ratio
    even = (K % 2 == 0)
    pad_left = K // 2 - int(even)

    taps = tuple(float(v) for v in kaiser_sinc_filter1d(0.5 / ratio, 0.6 / ratio, K))

    R = B * C
    T_out = (T - 1) // stride + 1                # == conv1d output length with this padding
    assert (K - 1) // stride < HALO, "kernel_size too large for the 128-lane halo"

    # --- tile sizes --------------------------------------------------------------
    # Lane tile: always a multiple of 128 (output/input lane blocks stay legal; ragged
    # or oversized edge blocks are masked by Pallas).  Row tile: full-dim when a single
    # row block suffices (always legal), otherwise a multiple of 8 with a ragged tail.
    if T_out <= t_tile:
        T_TILE = _round_up(T_out, 128)
    else:
        nt = pl.cdiv(T_out, t_tile)
        T_TILE = _round_up(pl.cdiv(T_out, nt), 128)
    NT = pl.cdiv(T_out, T_TILE)

    nr = pl.cdiv(R, r_tile)
    R_TILE = R if nr == 1 else _round_up(pl.cdiv(R, nr), 8)
    NR = pl.cdiv(R, R_TILE)

    # --- single fused glue pass: replicate-pad + polyphase split -------------------
    # Extra right padding is edge-replicated too; it only feeds output columns that are
    # masked on store, so semantics match PyTorch's replicate pad exactly.
    Lp = NT * T_TILE + HALO                      # per-phase padded length (mult. of 128)
    Tp = stride * Lp
    x2 = x.reshape(R, T)
    x_pad = jnp.pad(x2, ((0, 0), (pad_left, Tp - pad_left - T)), mode="edge")
    xph = jnp.moveaxis(x_pad.reshape(R, Lp, stride), -1, 0)     # (stride, R, Lp)
    # TODO(synk): read x_pad directly in-kernel (lane-strided loads / pl.Element
    # overlapping windows) to drop this de-interleave; pad+reshape+moveaxis fuse into
    # a single XLA HBM pass, so the remaining glue cost is one padded input write.

    # --- VMEM budget & advisory cost ----------------------------------------------
    itemsize = jnp.dtype(x.dtype).itemsize
    block_bytes = (stride * R_TILE * T_TILE          # main input block
                   + stride * R_TILE * HALO          # halo block
                   + R_TILE * T_TILE) * itemsize     # output block
    scratch_bytes = stride * R_TILE * (T_TILE + HALO) * itemsize
    vmem_need = 2 * block_bytes + scratch_bytes      # double-buffered blocks + scratch
    vmem_limit = int(min(64 * 1024 * 1024,           # safe on v7x (64 MiB physical)
                         max(32 * 1024 * 1024, 3 * vmem_need // 2)))

    cost = pl.CostEstimate(
        flops=int(2 * K * R * T_out),
        transcendentals=0,
        bytes_accessed=int((stride * R * Lp                       # main input
                            + NR * NT * stride * R_TILE * HALO    # halo re-read
                            + R * T_out) * itemsize),             # output
    )

    kernel = _make_fir_kernel(taps, stride, T_TILE)

    out = pl.pallas_call(
        kernel,
        out_shape=jax.ShapeDtypeStruct((R, T_out), x.dtype),      # exact shape: no slice
        grid_spec=pltpu.PrefetchScalarGridSpec(
            num_scalar_prefetch=0,
            grid=(NR, NT),
            in_specs=[
                # main tile of every phase
                pl.BlockSpec((stride, R_TILE, T_TILE), lambda i, j: (0, i, j)),
                # 128-lane halo: the granule immediately after this tile's window
                pl.BlockSpec(
                    (stride, R_TILE, HALO),
                    lambda i, j: (0, i, (j + 1) * (T_TILE // HALO)),
                ),
            ],
            out_specs=pl.BlockSpec((R_TILE, T_TILE), lambda i, j: (i, j)),
            scratch_shapes=[pltpu.VMEM((stride, R_TILE, T_TILE + HALO), x.dtype)],
        ),
        compiler_params=pltpu.CompilerParams(
            dimension_semantics=("parallel", "parallel"),
            vmem_limit_bytes=vmem_limit,
        ),
        cost_estimate=cost,
    )(xph, xph)

    return out.reshape(B, C, T_out)


# ----------------------------------------------------------------------------
# Reference (pure numpy) for correctness checks
# ----------------------------------------------------------------------------
def _ref_downsample1d(x_np, ratio=2, kernel_size=None):
    B, C, T = x_np.shape
    K = int(6 * ratio // 2) * 2 if kernel_size is None else kernel_size
    stride = ratio
    filt = kaiser_sinc_filter1d(0.5 / ratio, 0.6 / ratio, K)
    even = (K % 2 == 0)
    pad_left = K // 2 - int(even)
    pad_right = K // 2
    xr = x_np.reshape(B * C, T)
    x_pad = np.concatenate(
        [np.repeat(xr[:, :1], pad_left, axis=1), xr, np.repeat(xr[:, -1:], pad_right, axis=1)],
        axis=1,
    )
    T_pad = x_pad.shape[1]
    T_out = (T_pad - K) // stride + 1
    out = np.zeros((B * C, T_out), dtype=np.float32)
    for t in range(T_out):
        out[:, t] = (x_pad[:, t * stride: t * stride + K] * filt[None, :]).sum(axis=1)
    return out.reshape(B, C, T_out)


if __name__ == "__main__":
    key = jax.random.PRNGKey(0)
    ratio = 2

    # 1) spec-sized demo: B=2, C=4, T=16 (single tile, partial lane block, masked store)
    B, C, T = 2, 4, 16
    x = jax.random.normal(key, (B, C, T), dtype=jnp.float32)
    y = downsample1d(x, ratio=ratio)
    jax.block_until_ready(y)
    y_ref = _ref_downsample1d(np.asarray(x), ratio=ratio)
    assert y.shape == (B, C, T // ratio), y.shape
    np.testing.assert_allclose(np.asarray(y), y_ref, rtol=1e-4, atol=1e-5)

    # 2) lane-aligned case: T_out is exactly one 128-lane block (no masking anywhere)
    xb = jax.random.normal(jax.random.PRNGKey(2), (2, 4, 256), dtype=jnp.float32)
    yb = downsample1d(xb, ratio=ratio)
    jax.block_until_ready(yb)
    np.testing.assert_allclose(
        np.asarray(yb), _ref_downsample1d(np.asarray(xb), ratio=ratio), rtol=1e-4, atol=1e-5
    )

    # 3) multi-tile grid (row tiles x time tiles, cross-tile halo, ragged last time block)
    x2 = jax.random.normal(jax.random.PRNGKey(1), (2, 8, 1000), dtype=jnp.float32)
    y2 = downsample1d(x2, ratio=ratio, r_tile=8, t_tile=128)
    jax.block_until_ready(y2)
    np.testing.assert_allclose(
        np.asarray(y2), _ref_downsample1d(np.asarray(x2), ratio=ratio), rtol=1e-4, atol=1e-5
    )

    # 4) bf16 passthrough (HBM traffic stays bf16, accumulation in f32)
    x_bf = x.astype(jnp.bfloat16)
    y_bf = downsample1d(x_bf, ratio=ratio)
    jax.block_until_ready(y_bf)
    y_bf_ref = _ref_downsample1d(np.asarray(x_bf.astype(jnp.float32)), ratio=ratio)
    np.testing.assert_allclose(
        np.asarray(y_bf.astype(jnp.float32)), y_bf_ref, rtol=2e-2, atol=2e-2
    )

    print("KERNEL_OK")
</pallas_src>

<mosaic_0001>
module attributes {stable_mosaic.version = 11 : i64} {
  func.func @kernel(%arg0: i32, %arg1: i32, %arg2: memref<2x8x128xf32, #tpu.memory_space<vmem>>, %arg3: memref<2x8x128xf32, #tpu.memory_space<vmem>>, %arg4: memref<8x128xf32, #tpu.memory_space<vmem>>, %arg5: memref<2x8x256xf32, #tpu.memory_space<vmem>>) attributes {dimension_semantics = [#tpu.dimension_semantics<parallel>, #tpu.dimension_semantics<parallel>], iteration_bounds = array<i64: 1, 1>, scalar_prefetch = 0 : i64, scratch_operands = 1 : i64, tpu.core_type = #tpu.core_type<tc>, window_params = [{transform_indices = @transform_0, window_bounds = array<i64: 2, 8, 128>}, {transform_indices = @transform_1, window_bounds = array<i64: 2, 8, 128>}, {transform_indices = @transform_2, window_bounds = array<i64: 8, 128>}]} {
    %c0 = arith.constant 0 : index
    %c0_0 = arith.constant 0 : index
    %c0_1 = arith.constant 0 : index
    %0 = vector.load %arg2[%c0, %c0_0, %c0_1] : memref<2x8x128xf32, #tpu.memory_space<vmem>>, vector<2x8x128xf32>
    %c0_2 = arith.constant 0 : index
    %c0_3 = arith.constant 0 : index
    %c0_4 = arith.constant 0 : index
    %1 = vector.load %arg5[%c0_2, %c0_3, %c0_4] : memref<2x8x256xf32, #tpu.memory_space<vmem>>, vector<2x8x128xf32>
    tpu.vector_store %arg5[%c0_2, %c0_3, %c0_4], %0 {strides = array<i32>} : memref<2x8x256xf32, #tpu.memory_space<vmem>>, vector<2x8x128xf32>,
    %c0_5 = arith.constant 0 : index
    %c0_6 = arith.constant 0 : index
    %c0_7 = arith.constant 0 : index
    %2 = vector.load %arg3[%c0_5, %c0_6, %c0_7] : memref<2x8x128xf32, #tpu.memory_space<vmem>>, vector<2x8x128xf32>
    %c0_8 = arith.constant 0 : index
    %c0_9 = arith.constant 0 : index
    %c128 = arith.constant 128 : index
    %3 = vector.load %arg5[%c0_8, %c0_9, %c128] : memref<2x8x256xf32, #tpu.memory_space<vmem>>, vector<2x8x128xf32>
    tpu.vector_store %arg5[%c0_8, %c0_9, %c128], %2 {strides = array<i32>} : memref<2x8x256xf32, #tpu.memory_space<vmem>>, vector<2x8x128xf32>,
    %cst = arith.constant 0.000000e+00 : f32
    %4 = vector.broadcast %cst : f32 to vector<8x128xf32>
    %cst_10 = arith.constant 0.000000e+00 : f32
    %5 = vector.broadcast %cst_10 : f32 to vector<8x128xf32>
    %c0_11 = arith.constant 0 : index
    %c0_12 = arith.constant 0 : index
    %c0_13 = arith.constant 0 : index
    %6 = vector.load %arg5[%c0_11, %c0_12, %c0_13] : memref<2x8x256xf32, #tpu.memory_space<vmem>>, vector<1x8x128xf32>
    %7 = vector.shape_cast %6 : vector<1x8x128xf32> to vector<8x128xf32>
    %cst_14 = arith.constant 0.00202896656 : f32
    %8 = vector.broadcast %cst_14 : f32 to vector<8x128xf32>
    %9 = arith.mulf %8, %7 : vector<8x128xf32>
    %10 = arith.addf %4, %9 : vector<8x128xf32>
    %c1 = arith.constant 1 : index
    %c0_15 = arith.constant 0 : index
    %c0_16 = arith.constant 0 : index
    %11 = vector.load %arg5[%c1, %c0_15, %c0_16] : memref<2x8x256xf32, #tpu.memory_space<vmem>>, vector<1x8x128xf32>
    %12 = vector.shape_cast %11 : vector<1x8x128xf32> to vector<8x128xf32>
    %cst_17 = arith.constant 0.00938946381 : f32
    %13 = vector.broadcast %cst_17 : f32 to vector<8x128xf32>
    %14 = arith.mulf %13, %12 : vector<8x128xf32>
    %15 = arith.addf %5, %14 : vector<8x128xf32>
    %c0_18 = arith.constant 0 : index
    %c0_19 = arith.constant 0 : index
    %c1_20 = arith.constant 1 : index
    %16 = vector.load %arg5[%c0_18, %c0_19, %c1_20] : memref<2x8x256xf32, #tpu.memory_space<vmem>>, vector<1x8x128xf32>
    %17 = vector.shape_cast %16 : vector<1x8x128xf32> to vector<8x128xf32>
    %cst_21 = arith.constant -0.0255434643 : f32
    %18 = vector.broadcast %cst_21 : f32 to vector<8x128xf32>
    %19 = arith.mulf %18, %17 : vector<8x128xf32>
    %20 = arith.addf %10, %19 : vector<8x128xf32>
    %c1_22 = arith.constant 1 : index
    %c0_23 = arith.constant 0 : index
    %c1_24 = arith.constant 1 : index
    %21 = vector.load %arg5[%c1_22, %c0_23, %c1_24] : memref<2x8x256xf32, #tpu.memory_space<vmem>>, vector<1x8x128xf32>
    %22 = vector.shape_cast %21 : vector<1x8x128xf32> to vector<8x128xf32>
    %cst_25 = arith.constant -0.0576573759 : f32
    %23 = vector.broadcast %cst_25 : f32 to vector<8x128xf32>
    %24 = arith.mulf %23, %22 : vector<8x128xf32>
    %25 = arith.addf %15, %24 : vector<8x128xf32>
    %c0_26 = arith.constant 0 : index
    %c0_27 = arith.constant 0 : index
    %c2 = arith.constant 2 : index
    %26 = vector.load %arg5[%c0_26, %c0_27, %c2] : memref<2x8x256xf32, #tpu.memory_space<vmem>>, vector<1x8x128xf32>
    %27 = vector.shape_cast %26 : vector<1x8x128xf32> to vector<8x128xf32>
    %cst_28 = arith.constant 0.128572613 : f32
    %28 = vector.broadcast %cst_28 : f32 to vector<8x128xf32>
    %29 = arith.mulf %28, %27 : vector<8x128xf32>
    %30 = arith.addf %20, %29 : vector<8x128xf32>
    %c1_29 = arith.constant 1 : index
    %c0_30 = arith.constant 0 : index
    %c2_31 = arith.constant 2 : index
    %31 = vector.load %arg5[%c1_29, %c0_30, %c2_31] : memref<2x8x256xf32, #tpu.memory_space<vmem>>, vector<1x8x128xf32>
    %32 = vector.shape_cast %31 : vector<1x8x128xf32> to vector<8x128xf32>
    %cst_32 = arith.constant 0.443209797 : f32
    %33 = vector.broadcast %cst_32 : f32 to vector<8x128xf32>
    %34 = arith.mulf %33, %32 : vector<8x128xf32>
    %35 = arith.addf %25, %34 : vector<8x128xf32>
    %c0_33 = arith.constant 0 : index
    %c0_34 = arith.constant 0 : index
    %c3 = arith.constant 3 : index
    %36 = vector.load %arg5[%c0_33, %c0_34, %c3] : memref<2x8x256xf32, #tpu.memory_space<vmem>>, vector<1x8x128xf32>
    %37 = vector.shape_cast %36 : vector<1x8x128xf32> to vector<8x128xf32>
    %cst_35 = arith.constant 0.443209797 : f32
    %38 = vector.broadcast %cst_35 : f32 to vector<8x128xf32>
    %39 = arith.mulf %38, %37 : vector<8x128xf32>
    %40 = arith.addf %30, %39 : vector<8x128xf32>
    %c1_36 = arith.constant 1 : index
    %c0_37 = arith.constant 0 : index
    %c3_38 = arith.constant 3 : index
    %41 = vector.load %arg5[%c1_36, %c0_37, %c3_38] : memref<2x8x256xf32, #tpu.memory_space<vmem>>, vector<1x8x128xf32>
    %42 = vector.shape_cast %41 : vector<1x8x128xf32> to vector<8x128xf32>
    %cst_39 = arith.constant 0.128572613 : f32
    %43 = vector.broadcast %cst_39 : f32 to vector<8x128xf32>
    %44 = arith.mulf %43, %42 : vector<8x128xf32>
    %45 = arith.addf %35, %44 : vector<8x128xf32>
    %c0_40 = arith.constant 0 : index
    %c0_41 = arith.constant 0 : index
    %c4 = arith.constant 4 : index
    %46 = vector.load %arg5[%c0_40, %c0_41, %c4] : memref<2x8x256xf32, #tpu.memory_space<vmem>>, vector<1x8x128xf32>
    %47 = vector.shape_cast %46 : vector<1x8x128xf32> to vector<8x128xf32>
    %cst_42 = arith.constant -0.0576573759 : f32
    %48 = vector.broadcast %cst_42 : f32 to vector<8x128xf32>
    %49 = arith.mulf %48, %47 : vector<8x128xf32>
    %50 = arith.addf %40, %49 : vector<8x128xf32>
    %c1_43 = arith.constant 1 : index
    %c0_44 = arith.constant 0 : index
    %c4_45 = arith.constant 4 : index
    %51 = vector.load %arg5[%c1_43, %c0_44, %c4_45] : memref<2x8x256xf32, #tpu.memory_space<vmem>>, vector<1x8x128xf32>
    %52 = vector.shape_cast %51 : vector<1x8x128xf32> to vector<8x128xf32>
    %cst_46 = arith.constant -0.0255434643 : f32
    %53 = vector.broadcast %cst_46 : f32 to vector<8x128xf32>
    %54 = arith.mulf %53, %52 : vector<8x128xf32>
    %55 = arith.addf %45, %54 : vector<8x128xf32>
    %c0_47 = arith.constant 0 : index
    %c0_48 = arith.constant 0 : index
    %c5 = arith.constant 5 : index
    %56 = vector.load %arg5[%c0_47, %c0_48, %c5] : memref<2x8x256xf32, #tpu.memory_space<vmem>>, vector<1x8x128xf32>
    %57 = vector.shape_cast %56 : vector<1x8x128xf32> to vector<8x128xf32>
    %cst_49 = arith.constant 0.00938946381 : f32
    %58 = vector.broadcast %cst_49 : f32 to vector<8x128xf32>
    %59 = arith.mulf %58, %57 : vector<8x128xf32>
    %60 = arith.addf %50, %59 : vector<8x128xf32>
    %c1_50 = arith.constant 1 : index
    %c0_51 = arith.constant 0 : index
    %c5_52 = arith.constant 5 : index
    %61 = vector.load %arg5[%c1_50, %c0_51, %c5_52] : memref<2x8x256xf32, #tpu.memory_space<vmem>>, vector<1x8x128xf32>
    %62 = vector.shape_cast %61 : vector<1x8x128xf32> to vector<8x128xf32>
    %cst_53 = arith.constant 0.00202896656 : f32
    %63 = vector.broadcast %cst_53 : f32 to vector<8x128xf32>
    %64 = arith.mulf %63, %62 : vector<8x128xf32>
    %65 = arith.addf %55, %64 : vector<8x128xf32>
    %66 = arith.addf %60, %65 : vector<8x128xf32>
    %c0_54 = arith.constant 0 : index
    %c0_55 = arith.constant 0 : index
    %67 = vector.load %arg4[%c0_54, %c0_55] : memref<8x128xf32, #tpu.memory_space<vmem>>, vector<8x128xf32>
    tpu.vector_store %arg4[%c0_54, %c0_55], %66 {strides = array<i32>} : memref<8x128xf32, #tpu.memory_space<vmem>>, vector<8x128xf32>,
    return
  }
  func.func @transform_0(%arg0: i32, %arg1: i32) -> (i32, i32, i32) {
    %c0_i32 = arith.constant 0 : i32
    %c0_i32_0 = arith.constant 0 : i32
    return %c0_i32, %arg0, %arg1 : i32, i32, i32
  }
  func.func @transform_1(%arg0: i32, %arg1: i32) -> (i32, i32, i32) {
    %c1_i32 = arith.constant 1 : i32
    %0 = arith.addi %arg1, %c1_i32 : i32
    %c1_i32_0 = arith.constant 1 : i32
    %1 = arith.muli %0, %c1_i32_0 : i32
    %c0_i32 = arith.constant 0 : i32
    %c0_i32_1 = arith.constant 0 : i32
    return %c0_i32, %arg0, %1 : i32, i32, i32
  }
  func.func @transform_2(%arg0: i32, %arg1: i32) -> (i32, i32) {
    %c0_i32 = arith.constant 0 : i32
    return %arg0, %arg1 : i32, i32
  }
}

</mosaic_0001>

<bundles_post_ra>
// kernel: downsample1d.1
= control target key start
LH: loop header
LB: loop body
LE: loop exit
PB: predicated region body
PF: predicated region fallthrough
CT: control target
= control target key end

     0   :  { %s281_s17 = smov 127   ;;  %s333_s0 = inlined_call_operand.vmem [shape: f32[2,8,256], index: 0, kind: input, shape index: {}, may-alias: {0,1}]   ;;  %s334_s1 = inlined_call_operand.vmem [shape: f32[2,8,256], index: 1, kind: input, shape index: {}, may-alias: {0,1}]   ;;  %s335_s2 = inlined_call_operand.hbm [shape: f32[8,8], index: 2, kind: output, shape index: {}]  }
   0x1   :  { %v305_v0 = vld [vmem:[%s333_s0 + $0x10] sm:$0xff]  ;;  %v310_v1 = vld [vmem:[%s333_s0] sm:$0xff]  ;;  %v252_v2 = vld [vmem:[%s334_s1 + $0x18] sm:$0xff] }
   0x2   :  { %v123_v3 = vmul.f32 -0.057657376, %v305_v0  ;;  %v110_v4 = vmul.f32 -0.025543464, %v310_v1  ;;  %v251_v5 = vld [vmem:[%s334_s1 + $0x8] sm:$0xff] }
   0x3   :  { %v124_v6 = vmul.f32 -0.057657376, %v252_v2  ;;  %v111_v7 = vmul.f32 -0.025543464, %v251_v5  ;;  %v135_v8 = vmul.f32 0.12857261, %v251_v5 }
   0x4   :  { %127 = vrot.lane.b32.xlu1 %v123_v3, %s281_s17  ;;  %114 = vrot.lane.b32.xlu0 %v110_v4, %s281_s17  ;;  %v134_v9 = vmul.f32 0.12857261, %v310_v1 }
   0x8   :  { %129 = vrot.lane.b32.xlu1 %v124_v6, %s281_s17  ;;  %116 = vrot.lane.b32.xlu0 %v111_v7, %s281_s17 }
   0x9   :  { %7 = vsyncpa [#allocation6], 0  ;;  %s282_s0 = smov 126   ;;  %v147_v10 = vmul.f32 0.4432098, %v252_v2  ;;  %s283_s1 = smov 125  }
   0xa   :  { %v146_v11 = vmul.f32 0.4432098, %v305_v0  ;;  %v158_v12 = vmul.f32 0.4432098, %v251_v5  ;;  %v157_v13 = vmul.f32 0.4432098, %v310_v1 }
   0xb   :  { %v170_v14 = vmul.f32 0.12857261, %v252_v2  ;;  %v169_v15 = vmul.f32 0.12857261, %v305_v0  ;;  %v181_v16 = vmul.f32 -0.057657376, %v251_v5 }
   0xc   :  { %140 = vrot.lane.b32.xlu1 %v135_v8, %s282_s0  ;;  %138 = vrot.lane.b32.xlu0 %v134_v9, %s282_s0  ;;  %v180_v17 = vmul.f32 -0.057657376, %v310_v1  ;;  %s284_s18 = smov 124   ;;  %v193_v18 = vmul.f32 -0.025543464, %v252_v2  ;;  %s285_s19 = smov 123  }
   0xd   :  { %v192_v19 = vmul.f32 -0.025543464, %v305_v0  ;;  %v204_v20 = vmul.f32 0.009389464, %v251_v5  ;;  %v203_v21 = vmul.f32 0.009389464, %v310_v1 }
   0xe   :  { %v216_v22 = vmul.f32 0.0020289666, %v252_v2  ;;  %v215_v23 = vmul.f32 0.0020289666, %v305_v0  ;;  %vm118_vm0 = vcmask 1039360   ;;  %vm142_vm1 = vcmask 1031168  }
   0xf   :  { %v107_v38 = vmul.f32 0.009389464, %v305_v0  ;;  %v103_v39 = vmul.f32 0.0020289666, %v310_v1  ;;  %vm165_vm2 = vcmask 1022976   ;;  %vm188_vm3 = vcmask 1014784  }
  0x10   :  { %152 = vrot.lane.b32.xlu1 %v147_v10, %s282_s0  ;;  %150 = vrot.lane.b32.xlu0 %v146_v11, %s282_s0  ;;  %vm211_vm4 = vcmask 1006592   ;;  %s286_s20 = smov [#allocation5]  }
  0x11   :  { %s234_s21 = sshll.u32 %s286_s20, 4  ;;  %s235_s21 = int_to_ptr.vmem [resolvable:$true] %s234_s21 }
  0x12   :  { %s259_s22 = scalar_lea.vmem %s235_s21, 128  ;;  %p264_p1 = scmp.lt.s32.totalorder %s235_s21, %s235_s21 }
  0x13   :  { %p260_p0 = scmp.ne.s32.totalorder %s235_s21, %s259_s22  ;;  %p265_p2 = scmp.lt.s32.totalorder %s259_s22, %s259_s22 }
  0x14   :  { %163 = vrot.lane.b32.xlu1 %v158_v12, %s283_s1  ;;  %161 = vrot.lane.b32.xlu0 %v157_v13, %s283_s1 }
  0x15   :  { %p266_p3 = por %p265_p2, %p264_p1 }
  0x17   :  { %p267_p4 = pnand %p266_p3, %p260_p0 }
  0x18   :  { %175 = vrot.lane.b32.xlu1 %v170_v14, %s283_s1  ;;  %173 = vrot.lane.b32.xlu0 %v169_v15, %s283_s1 }
  0x1c   :  { %186 = vrot.lane.b32.xlu1 %v181_v16, %s284_s18  ;;  %184 = vrot.lane.b32.xlu0 %v180_v17, %s284_s18 }
  0x20   :  { %198 = vrot.lane.b32.xlu1 %v193_v18, %s284_s18  ;;  %196 = vrot.lane.b32.xlu0 %v192_v19, %s284_s18 }
  0x24   :  { %209 = vrot.lane.b32.xlu1 %v204_v20, %s285_s19  ;;  %207 = vrot.lane.b32.xlu0 %v203_v21, %s285_s19 }
  0x28   :  { %221 = vrot.lane.b32.xlu1 %v216_v22, %s285_s19  ;;  %219 = vrot.lane.b32.xlu0 %v215_v23, %s285_s19 }
  0x76   :  { %v128_v24 = vpop.permute.xlu1 %127  ;;  %v115_v25 = vpop.permute.xlu0 %114 }
  0x7a   :  { %v130_v26 = vpop.permute.xlu1 %129  ;;  %v117_v27 = vpop.permute.xlu0 %116 }
  0x7b   :  { %v131_v40 = vsel %vm118_vm0, %v128_v24, %v130_v26  ;;  %v119_v41 = vsel %vm118_vm0, %v115_v25, %v117_v27 }
  0x7c   :  { %v133_v46 = vadd.f32 %v131_v40, %v107_v38  ;;  %v121_v47 = vadd.f32 %v119_v41, %v103_v39 }
  0x7e   :  { %v141_v28 = vpop.permute.xlu1 %140  ;;  %v139_v29 = vpop.permute.xlu0 %138 }
  0x7f   :  { %v143_v44 = vsel %vm142_vm1, %v139_v29, %v141_v28 }
  0x80   :  { %v145_v50 = vadd.f32 %v143_v44, %v121_v47 }
  0x82   :  { %v153_v30 = vpop.permute.xlu1 %152  ;;  %v151_v31 = vpop.permute.xlu0 %150 }
  0x83   :  { %v154_v45 = vsel %vm142_vm1, %v151_v31, %v153_v30 }
  0x84   :  { %v156_v51 = vadd.f32 %v154_v45, %v133_v46 }
  0x86   :  { %v164_v32 = vpop.permute.xlu1 %163  ;;  %v162_v33 = vpop.permute.xlu0 %161 }
  0x87   :  { %v166_v48 = vsel %vm165_vm2, %v162_v33, %v164_v32 }
  0x88   :  { %v168_v56 = vadd.f32 %v166_v48, %v145_v50 }
  0x8a   :  { %v176_v34 = vpop.permute.xlu1 %175  ;;  %v174_v35 = vpop.permute.xlu0 %173 }
  0x8b   :  { %v177_v49 = vsel %vm165_vm2, %v174_v35, %v176_v34 }
  0x8c   :  { %v179_v57 = vadd.f32 %v177_v49, %v156_v51 }
  0x8e   :  { %v187_v36 = vpop.permute.xlu1 %186  ;;  %v185_v37 = vpop.permute.xlu0 %184 }
  0x8f   :  { %v189_v54 = vsel %vm188_vm3, %v185_v37, %v187_v36 }
  0x90   :  { %v191_v59 = vadd.f32 %v189_v54, %v168_v56 }
  0x92   :  { %v199_v42 = vpop.permute.xlu1 %198  ;;  %v197_v43 = vpop.permute.xlu0 %196 }
  0x93   :  { %v200_v55 = vsel %vm188_vm3, %v197_v43, %v199_v42 }
  0x94   :  { %v202_v60 = vadd.f32 %v200_v55, %v179_v57 }
  0x96   :  { %v210_v52 = vpop.permute.xlu1 %209  ;;  %v208_v53 = vpop.permute.xlu0 %207 }
  0x97   :  { %v212_v58 = vsel %vm211_vm4, %v208_v53, %v210_v52 }
  0x98   :  { %v214_v0 = vadd.f32 %v212_v58, %v191_v59 }
  0x9a   :  { %v222_v61 = vpop.permute.xlu1 %221  ;;  %v220_v62 = vpop.permute.xlu0 %219 }
  0x9b   :  { %v223_v63 = vsel %vm211_vm4, %v220_v62, %v222_v61 }
  0x9c   :  { %v225_v1 = vadd.f32 %v223_v63, %v202_v60 }
  0x9e   :  { %v226_v2 = vadd.f32 %v225_v1, %v214_v0 }
  0xa0   :  { %227 = vst [vmem:[#allocation5] sm:$0xff] %v226_v2 }
  0xa1   :  { %270 = shalt.err (!%p267_p4)
}
  0xa2   :  { %237 = dma.vmem_to_hbm [thread:$0]  %s235_s21, 128, %s335_s2, [#allocation6]  }
  0xa3   :  { %279 = dma.done.wait [#allocation6], 128  }
  0xa4   :  { %280 = vsyncadd [#allocation6], 4294967168 }
  0xa5   :  { %241 = vsyncpa [#allocation6], 1 }

</bundles_post_ra>
